<compile_context>
chip_gen: v5e
topology: v5e:2x2
jax: 0.10.0
libtpu: 0.0.40
codegen_flags: <defaults>
</compile_context>

<pallas_src>
import functools

import jax
import jax.numpy as jnp
from jax import lax
from jax.experimental import pallas as pl
from jax.experimental.pallas import tpu as pltpu


_DMA_WINDOW = 8  # max in-flight row DMAs per grid step


def _round_up(x: int, m: int) -> int:
    return ((x + m - 1) // m) * m


def _embed_gather_kernel(ids_ref, table_hbm, out_ref, sem):
    """One grid step: DMA-gather TB embedding rows from HBM into the out tile.

    ids_ref   : SMEM (N_pad,) int32  -- all token ids (scalar-prefetched)
    table_hbm : ANY/HBM (V, D)       -- embedding table, never copied to VMEM
    out_ref   : VMEM (TB, D)         -- output tile for this token block
    sem       : DMA semaphores (_DMA_WINDOW,)
    """
    tb = out_ref.shape[0]
    base = pl.program_id(0) * tb
    w = min(_DMA_WINDOW, tb)  # tb is always >= 8, so w == 8 (power of two)

    def start_row(row):
        tok = ids_ref[base + row]
        pltpu.make_async_copy(
            table_hbm.at[pl.ds(tok, 1)],
            out_ref.at[pl.ds(row, 1)],
            sem.at[row % w],
        ).start()

    def wait_row(row):
        # Placeholder slices: only the (1, D) byte count and the semaphore
        # slot matter for the wait (same pattern as the paged-attention ref).
        pltpu.make_async_copy(
            table_hbm.at[pl.ds(0, 1)],
            out_ref.at[pl.ds(0, 1)],
            sem.at[row % w],
        ).wait()

    # Prologue: put the first `w` row copies in flight.
    for r in range(w):
        start_row(r)

    # Steady state: retire row r, start row r + w (bounded in-flight window).
    if tb > w:
        def steady(r, carry):
            wait_row(r)
            start_row(r + w)
            return carry
        lax.fori_loop(0, tb - w, steady, 0)

    # Epilogue: retire the last `w` rows before the tile is written back.
    def drain(r, carry):
        wait_row(r)
        return carry
    lax.fori_loop(tb - w, tb, drain, 0)


@functools.partial(jax.jit, static_argnames=("token_block",))
def token_embedding(ids: jax.Array, emb_table: jax.Array, *,
                    token_block: int = 128) -> jax.Array:
    """Pallas equivalent of nn.Embedding(vocab_size, d_model)(ids)."""
    V, D = emb_table.shape
    id_shape = ids.shape
    N = 1
    for s in id_shape:
        N *= int(s)

    # Dtype-aware sublane multiple for the (TB, D) output tile.
    sub = {4: 8, 2: 16, 1: 32}[jnp.dtype(emb_table.dtype).itemsize]

    N_sub = _round_up(N, sub)
    TB = min(token_block, N_sub)
    # Keep >= 2 token tiles whenever possible (v7x has two TensorCores).
    if N_sub >= 2 * sub:
        TB = min(TB, max(sub, (N_sub // 2) // sub * sub))
    N_pad = _round_up(N, TB)
    num_tb = N_pad // TB

    flat_ids = ids.reshape(N).astype(jnp.int32)
    # TODO(synk): nn.Embedding raises on ids outside [0, V); here we clamp them
    # instead of erroring (a Pallas kernel cannot raise).
    flat_ids = jnp.clip(flat_ids, 0, V - 1)
    if N_pad != N:
        flat_ids = jnp.pad(flat_ids, (0, N_pad - N))  # padded rows gather row 0; sliced off

    out_flat = pl.pallas_call(
        _embed_gather_kernel,
        out_shape=jax.ShapeDtypeStruct((N_pad, D), emb_table.dtype),
        grid_spec=pltpu.PrefetchScalarGridSpec(
            num_scalar_prefetch=1,                       # flat_ids -> SMEM
            grid=(num_tb,),
            in_specs=[pl.BlockSpec(memory_space=pl.ANY)],  # table stays in HBM
            out_specs=pl.BlockSpec((TB, D), lambda i, ids: (i, 0)),
            scratch_shapes=[pltpu.SemaphoreType.DMA((_DMA_WINDOW,))],
        ),
        compiler_params=pltpu.CompilerParams(
            dimension_semantics=("parallel",),
        ),
    )(flat_ids, emb_table)

    return out_flat[:N].reshape(*id_shape, D)


if __name__ == "__main__":
    # Small shapes consistent with the module: vocab=32, d_model=128, batch=2, seq=8
    vocab_size, d_model = 32, 128
    B, S = 2, 8

    key = jax.random.PRNGKey(0)
    k_ids, k_emb, k_ids2, k_emb2 = jax.random.split(key, 4)

    # nn.Embedding default init ~ N(0, 1)
    emb_table = jax.random.normal(k_emb, (vocab_size, d_model), dtype=jnp.float32)
    ids = jax.random.randint(k_ids, (B, S), 0, vocab_size, dtype=jnp.int32)

    out = jax.block_until_ready(token_embedding(ids, emb_table))
    ref = jnp.take(emb_table, ids, axis=0)

    assert out.shape == (B, S, d_model), out.shape
    assert out.dtype == jnp.float32, out.dtype
    # DMA row gather is bit-exact vs. the reference gather.
    assert jnp.array_equal(out, ref), "mismatch vs reference (small case)"

    # Larger case: non-multiple-of-8 token count and a bigger vocab, exercising
    # id padding, multiple token tiles and the steady-state DMA window.
    V2, B2, S2 = 1000, 4, 37
    emb_table2 = jax.random.normal(k_emb2, (V2, d_model), dtype=jnp.float32)
    ids2 = jax.random.randint(k_ids2, (B2, S2), 0, V2, dtype=jnp.int32)
    out2 = jax.block_until_ready(token_embedding(ids2, emb_table2))
    ref2 = jnp.take(emb_table2, ids2, axis=0)
    assert jnp.array_equal(out2, ref2), "mismatch vs reference (large case)"

    print("KERNEL_OK")
</pallas_src>

<mosaic_0001>
module attributes {stable_mosaic.version = 11 : i64} {
  func.func @_embed_gather_kernel(%arg0: i32, %arg1: memref<16xi32, #tpu.memory_space<smem>>, %arg2: memref<32x128xf32, #tpu.memory_space<any>>, %arg3: memref<8x128xf32, #tpu.memory_space<vmem>>, %arg4: memref<8x!tpu.dma_semaphore, #tpu.memory_space<semaphore_mem>>) attributes {dimension_semantics = [#tpu.dimension_semantics<parallel>], iteration_bounds = array<i64: 2>, scalar_prefetch = 1 : i64, scratch_operands = 1 : i64, tpu.core_type = #tpu.core_type<tc>, window_params = [{}, {transform_indices = @transform_1, window_bounds = array<i64: 8, 128>}]} {
    %c8_i32 = arith.constant 8 : i32
    %0 = arith.muli %arg0, %c8_i32 : i32
    %c0_i32 = arith.constant 0 : i32
    %1 = arith.addi %0, %c0_i32 : i32
    %2 = arith.index_cast %1 : i32 to index
    %3 = memref.load %arg1[%2] : memref<16xi32, #tpu.memory_space<smem>>
    %c0_i32_0 = arith.constant 0 : i32
    %c0_i32_1 = arith.constant 0 : i32
    %4 = tpu.memref_slice %arg2[%3, %c0_i32_1] : memref<32x128xf32, #tpu.memory_space<any>> -> memref<1x128xf32, #tpu.memory_space<any>>
    %c0_i32_2 = arith.constant 0 : i32
    %c0_i32_3 = arith.constant 0 : i32
    %5 = tpu.memref_slice %arg3[%c0_i32_2, %c0_i32_3] : memref<8x128xf32, #tpu.memory_space<vmem>> -> memref<1x128xf32, #tpu.memory_space<vmem>>
    %6 = tpu.memref_slice %arg4[%c0_i32_0] : memref<8x!tpu.dma_semaphore, #tpu.memory_space<semaphore_mem>> -> memref<1x!tpu.dma_semaphore, #tpu.memory_space<semaphore_mem>>
    %7 = tpu.memref_squeeze %6 : memref<1x!tpu.dma_semaphore, #tpu.memory_space<semaphore_mem>> -> memref<!tpu.dma_semaphore, #tpu.memory_space<semaphore_mem>>
    tpu.enqueue_dma source(%4 : memref<1x128xf32, #tpu.memory_space<any>>) target(%5 : memref<1x128xf32, #tpu.memory_space<vmem>>) target_semaphore(%7 : memref<!tpu.dma_semaphore, #tpu.memory_space<semaphore_mem>>)
    %c1_i32 = arith.constant 1 : i32
    %8 = arith.addi %0, %c1_i32 : i32
    %9 = arith.index_cast %8 : i32 to index
    %10 = memref.load %arg1[%9] : memref<16xi32, #tpu.memory_space<smem>>
    %c1_i32_4 = arith.constant 1 : i32
    %c0_i32_5 = arith.constant 0 : i32
    %11 = tpu.memref_slice %arg2[%10, %c0_i32_5] : memref<32x128xf32, #tpu.memory_space<any>> -> memref<1x128xf32, #tpu.memory_space<any>>
    %c1_i32_6 = arith.constant 1 : i32
    %c0_i32_7 = arith.constant 0 : i32
    %12 = tpu.memref_slice %arg3[%c1_i32_6, %c0_i32_7] : memref<8x128xf32, #tpu.memory_space<vmem>> -> memref<1x128xf32, #tpu.memory_space<vmem>>
    %13 = tpu.memref_slice %arg4[%c1_i32_4] : memref<8x!tpu.dma_semaphore, #tpu.memory_space<semaphore_mem>> -> memref<1x!tpu.dma_semaphore, #tpu.memory_space<semaphore_mem>>
    %14 = tpu.memref_squeeze %13 : memref<1x!tpu.dma_semaphore, #tpu.memory_space<semaphore_mem>> -> memref<!tpu.dma_semaphore, #tpu.memory_space<semaphore_mem>>
    tpu.enqueue_dma source(%11 : memref<1x128xf32, #tpu.memory_space<any>>) target(%12 : memref<1x128xf32, #tpu.memory_space<vmem>>) target_semaphore(%14 : memref<!tpu.dma_semaphore, #tpu.memory_space<semaphore_mem>>)
    %c2_i32 = arith.constant 2 : i32
    %15 = arith.addi %0, %c2_i32 : i32
    %16 = arith.index_cast %15 : i32 to index
    %17 = memref.load %arg1[%16] : memref<16xi32, #tpu.memory_space<smem>>
    %c2_i32_8 = arith.constant 2 : i32
    %c0_i32_9 = arith.constant 0 : i32
    %18 = tpu.memref_slice %arg2[%17, %c0_i32_9] : memref<32x128xf32, #tpu.memory_space<any>> -> memref<1x128xf32, #tpu.memory_space<any>>
    %c2_i32_10 = arith.constant 2 : i32
    %c0_i32_11 = arith.constant 0 : i32
    %19 = tpu.memref_slice %arg3[%c2_i32_10, %c0_i32_11] : memref<8x128xf32, #tpu.memory_space<vmem>> -> memref<1x128xf32, #tpu.memory_space<vmem>>
    %20 = tpu.memref_slice %arg4[%c2_i32_8] : memref<8x!tpu.dma_semaphore, #tpu.memory_space<semaphore_mem>> -> memref<1x!tpu.dma_semaphore, #tpu.memory_space<semaphore_mem>>
    %21 = tpu.memref_squeeze %20 : memref<1x!tpu.dma_semaphore, #tpu.memory_space<semaphore_mem>> -> memref<!tpu.dma_semaphore, #tpu.memory_space<semaphore_mem>>
    tpu.enqueue_dma source(%18 : memref<1x128xf32, #tpu.memory_space<any>>) target(%19 : memref<1x128xf32, #tpu.memory_space<vmem>>) target_semaphore(%21 : memref<!tpu.dma_semaphore, #tpu.memory_space<semaphore_mem>>)
    %c3_i32 = arith.constant 3 : i32
    %22 = arith.addi %0, %c3_i32 : i32
    %23 = arith.index_cast %22 : i32 to index
    %24 = memref.load %arg1[%23] : memref<16xi32, #tpu.memory_space<smem>>
    %c3_i32_12 = arith.constant 3 : i32
    %c0_i32_13 = arith.constant 0 : i32
    %25 = tpu.memref_slice %arg2[%24, %c0_i32_13] : memref<32x128xf32, #tpu.memory_space<any>> -> memref<1x128xf32, #tpu.memory_space<any>>
    %c3_i32_14 = arith.constant 3 : i32
    %c0_i32_15 = arith.constant 0 : i32
    %26 = tpu.memref_slice %arg3[%c3_i32_14, %c0_i32_15] : memref<8x128xf32, #tpu.memory_space<vmem>> -> memref<1x128xf32, #tpu.memory_space<vmem>>
    %27 = tpu.memref_slice %arg4[%c3_i32_12] : memref<8x!tpu.dma_semaphore, #tpu.memory_space<semaphore_mem>> -> memref<1x!tpu.dma_semaphore, #tpu.memory_space<semaphore_mem>>
    %28 = tpu.memref_squeeze %27 : memref<1x!tpu.dma_semaphore, #tpu.memory_space<semaphore_mem>> -> memref<!tpu.dma_semaphore, #tpu.memory_space<semaphore_mem>>
    tpu.enqueue_dma source(%25 : memref<1x128xf32, #tpu.memory_space<any>>) target(%26 : memref<1x128xf32, #tpu.memory_space<vmem>>) target_semaphore(%28 : memref<!tpu.dma_semaphore, #tpu.memory_space<semaphore_mem>>)
    %c4_i32 = arith.constant 4 : i32
    %29 = arith.addi %0, %c4_i32 : i32
    %30 = arith.index_cast %29 : i32 to index
    %31 = memref.load %arg1[%30] : memref<16xi32, #tpu.memory_space<smem>>
    %c4_i32_16 = arith.constant 4 : i32
    %c0_i32_17 = arith.constant 0 : i32
    %32 = tpu.memref_slice %arg2[%31, %c0_i32_17] : memref<32x128xf32, #tpu.memory_space<any>> -> memref<1x128xf32, #tpu.memory_space<any>>
    %c4_i32_18 = arith.constant 4 : i32
    %c0_i32_19 = arith.constant 0 : i32
    %33 = tpu.memref_slice %arg3[%c4_i32_18, %c0_i32_19] : memref<8x128xf32, #tpu.memory_space<vmem>> -> memref<1x128xf32, #tpu.memory_space<vmem>>
    %34 = tpu.memref_slice %arg4[%c4_i32_16] : memref<8x!tpu.dma_semaphore, #tpu.memory_space<semaphore_mem>> -> memref<1x!tpu.dma_semaphore, #tpu.memory_space<semaphore_mem>>
    %35 = tpu.memref_squeeze %34 : memref<1x!tpu.dma_semaphore, #tpu.memory_space<semaphore_mem>> -> memref<!tpu.dma_semaphore, #tpu.memory_space<semaphore_mem>>
    tpu.enqueue_dma source(%32 : memref<1x128xf32, #tpu.memory_space<any>>) target(%33 : memref<1x128xf32, #tpu.memory_space<vmem>>) target_semaphore(%35 : memref<!tpu.dma_semaphore, #tpu.memory_space<semaphore_mem>>)
    %c5_i32 = arith.constant 5 : i32
    %36 = arith.addi %0, %c5_i32 : i32
    %37 = arith.index_cast %36 : i32 to index
    %38 = memref.load %arg1[%37] : memref<16xi32, #tpu.memory_space<smem>>
    %c5_i32_20 = arith.constant 5 : i32
    %c0_i32_21 = arith.constant 0 : i32
    %39 = tpu.memref_slice %arg2[%38, %c0_i32_21] : memref<32x128xf32, #tpu.memory_space<any>> -> memref<1x128xf32, #tpu.memory_space<any>>
    %c5_i32_22 = arith.constant 5 : i32
    %c0_i32_23 = arith.constant 0 : i32
    %40 = tpu.memref_slice %arg3[%c5_i32_22, %c0_i32_23] : memref<8x128xf32, #tpu.memory_space<vmem>> -> memref<1x128xf32, #tpu.memory_space<vmem>>
    %41 = tpu.memref_slice %arg4[%c5_i32_20] : memref<8x!tpu.dma_semaphore, #tpu.memory_space<semaphore_mem>> -> memref<1x!tpu.dma_semaphore, #tpu.memory_space<semaphore_mem>>
    %42 = tpu.memref_squeeze %41 : memref<1x!tpu.dma_semaphore, #tpu.memory_space<semaphore_mem>> -> memref<!tpu.dma_semaphore, #tpu.memory_space<semaphore_mem>>
    tpu.enqueue_dma source(%39 : memref<1x128xf32, #tpu.memory_space<any>>) target(%40 : memref<1x128xf32, #tpu.memory_space<vmem>>) target_semaphore(%42 : memref<!tpu.dma_semaphore, #tpu.memory_space<semaphore_mem>>)
    %c6_i32 = arith.constant 6 : i32
    %43 = arith.addi %0, %c6_i32 : i32
    %44 = arith.index_cast %43 : i32 to index
    %45 = memref.load %arg1[%44] : memref<16xi32, #tpu.memory_space<smem>>
    %c6_i32_24 = arith.constant 6 : i32
    %c0_i32_25 = arith.constant 0 : i32
    %46 = tpu.memref_slice %arg2[%45, %c0_i32_25] : memref<32x128xf32, #tpu.memory_space<any>> -> memref<1x128xf32, #tpu.memory_space<any>>
    %c6_i32_26 = arith.constant 6 : i32
    %c0_i32_27 = arith.constant 0 : i32
    %47 = tpu.memref_slice %arg3[%c6_i32_26, %c0_i32_27] : memref<8x128xf32, #tpu.memory_space<vmem>> -> memref<1x128xf32, #tpu.memory_space<vmem>>
    %48 = tpu.memref_slice %arg4[%c6_i32_24] : memref<8x!tpu.dma_semaphore, #tpu.memory_space<semaphore_mem>> -> memref<1x!tpu.dma_semaphore, #tpu.memory_space<semaphore_mem>>
    %49 = tpu.memref_squeeze %48 : memref<1x!tpu.dma_semaphore, #tpu.memory_space<semaphore_mem>> -> memref<!tpu.dma_semaphore, #tpu.memory_space<semaphore_mem>>
    tpu.enqueue_dma source(%46 : memref<1x128xf32, #tpu.memory_space<any>>) target(%47 : memref<1x128xf32, #tpu.memory_space<vmem>>) target_semaphore(%49 : memref<!tpu.dma_semaphore, #tpu.memory_space<semaphore_mem>>)
    %c7_i32 = arith.constant 7 : i32
    %50 = arith.addi %0, %c7_i32 : i32
    %51 = arith.index_cast %50 : i32 to index
    %52 = memref.load %arg1[%51] : memref<16xi32, #tpu.memory_space<smem>>
    %c7_i32_28 = arith.constant 7 : i32
    %c0_i32_29 = arith.constant 0 : i32
    %53 = tpu.memref_slice %arg2[%52, %c0_i32_29] : memref<32x128xf32, #tpu.memory_space<any>> -> memref<1x128xf32, #tpu.memory_space<any>>
    %c7_i32_30 = arith.constant 7 : i32
    %c0_i32_31 = arith.constant 0 : i32
    %54 = tpu.memref_slice %arg3[%c7_i32_30, %c0_i32_31] : memref<8x128xf32, #tpu.memory_space<vmem>> -> memref<1x128xf32, #tpu.memory_space<vmem>>
    %55 = tpu.memref_slice %arg4[%c7_i32_28] : memref<8x!tpu.dma_semaphore, #tpu.memory_space<semaphore_mem>> -> memref<1x!tpu.dma_semaphore, #tpu.memory_space<semaphore_mem>>
    %56 = tpu.memref_squeeze %55 : memref<1x!tpu.dma_semaphore, #tpu.memory_space<semaphore_mem>> -> memref<!tpu.dma_semaphore, #tpu.memory_space<semaphore_mem>>
    tpu.enqueue_dma source(%53 : memref<1x128xf32, #tpu.memory_space<any>>) target(%54 : memref<1x128xf32, #tpu.memory_space<vmem>>) target_semaphore(%56 : memref<!tpu.dma_semaphore, #tpu.memory_space<semaphore_mem>>)
    %c0_i32_32 = arith.constant 0 : i32
    %c8_i32_33 = arith.constant 8 : i32
    %57 = arith.addi %c0_i32_32, %c8_i32_33 : i32
    %c1_i32_34 = arith.constant 1 : i32
    scf.for %arg5 = %c0_i32_32 to %57 step %c1_i32_34  : i32 {
      %c8_i32_36 = arith.constant 8 : i32
      %c0_i32_37 = arith.constant 0 : i32
      %58 = arith.cmpi eq, %c8_i32_36, %c0_i32_37 : i32
      %c1_i32_38 = arith.constant 1 : i32
      %59 = arith.select %58, %c1_i32_38, %c8_i32_36 : i32
      %60 = arith.remsi %arg5, %59 : i32
      %c0_i32_39 = arith.constant 0 : i32
      %61 = arith.cmpi ne, %60, %c0_i32_39 : i32
      %c0_i32_40 = arith.constant 0 : i32
      %62 = arith.cmpi slt, %60, %c0_i32_40 : i32
      %c0_i32_41 = arith.constant 0 : i32
      %63 = arith.cmpi slt, %59, %c0_i32_41 : i32
      %64 = arith.xori %62, %63 : i1
      %65 = arith.andi %64, %61 : i1
      %66 = arith.addi %60, %59 : i32
      %67 = arith.select %65, %66, %60 : i32
      %c0_i32_42 = arith.constant 0 : i32
      %c0_i32_43 = arith.constant 0 : i32
      %68 = tpu.memref_slice %arg2[%c0_i32_42, %c0_i32_43] : memref<32x128xf32, #tpu.memory_space<any>> -> memref<1x128xf32, #tpu.memory_space<any>>
      %c0_i32_44 = arith.constant 0 : i32
      %c0_i32_45 = arith.constant 0 : i32
      %69 = tpu.memref_slice %arg3[%c0_i32_44, %c0_i32_45] : memref<8x128xf32, #tpu.memory_space<vmem>> -> memref<1x128xf32, #tpu.memory_space<vmem>>
      %70 = tpu.memref_slice %arg4[%67] : memref<8x!tpu.dma_semaphore, #tpu.memory_space<semaphore_mem>> -> memref<1x!tpu.dma_semaphore, #tpu.memory_space<semaphore_mem>>
      %71 = tpu.memref_squeeze %70 : memref<1x!tpu.dma_semaphore, #tpu.memory_space<semaphore_mem>> -> memref<!tpu.dma_semaphore, #tpu.memory_space<semaphore_mem>>
      tpu.wait_dma2 semaphore(%71 : memref<!tpu.dma_semaphore, #tpu.memory_space<semaphore_mem>>) src(%68 : memref<1x128xf32, #tpu.memory_space<any>>) dst(%69 : memref<1x128xf32, #tpu.memory_space<vmem>>)
    }
    %c8_i32_35 = arith.constant 8 : i32
    return
  }
  func.func @transform_1(%arg0: i32, %arg1: memref<16xi32, #tpu.memory_space<smem>>) -> (i32, i32) {
    %c0_i32 = arith.constant 0 : i32
    %c0_i32_0 = arith.constant 0 : i32
    return %arg0, %c0_i32 : i32, i32
  }
}

</mosaic_0001>

<bundles_post_ra>
// kernel: token_embedding.1
= control target key start
LH: loop header
LB: loop body
LE: loop exit
PB: predicated region body
PF: predicated region fallthrough
CT: control target
= control target key end

     0   :  { %s680_s12 = smov [#allocation4]   ;;  %s880_s0 = inlined_call_operand.vmem [shape: s32[16], index: 0, kind: input, shape index: {}]   ;;  %s881_s1 = inlined_call_operand.hbm [shape: f32[32,128], index: 1, kind: input, shape index: {}]   ;;  %s882_s2 = inlined_call_operand.hbm [shape: f32[16,128], index: 2, kind: output, shape index: {}]  }
   0x1   :  { %s8_s11 = sshll.u32 %s880_s0, 4  ;;  %s9_s11 = int_to_ptr.vmem [resolvable:$true] %s8_s11 }
   0x2   :  { %11 = dma.vmem_to_smem %s9_s11, 16, %s680_s12, [#allocation3] }
   0x3   :  { %656 = dma.done.wait [#allocation3], 16 }
   0x4   :  { %657 = vsyncadd [#allocation3], 4294967280 }
   0x5   :  { %14 = sfence }
   0x6   :  { %15 = vsyncpa [#allocation6], 0 }
   0x7   :  { %17 = vsyncpa [#allocation6 + $0x1], 0  ;;  %s699_s13 = smov 0   ;;  %s701_s14 = smov 0  }
   0x8   :  { %s703_s15 = smov 0  }
   0x9 LB: > { %s348_s0 = sadd.s32 4294967295, %s674_s15   ;;  %s716_s16 = sadd.s32 1, %s674_s15   ;;  %s674_s15 = sphi %s703_s15, %s887_s15   ;;  %s670_s14 = sphi %s701_s14, %s886_s14   ;;  %s666_s13 = sphi %s699_s13, %s885_s13  }
   0xa   : > { %s26_s17 = ssub.s32 %s674_s15, %s716_s16  ;;  %s29_s18 = sadd.s32 1, %s670_s14 }
   0xb   : > { %p27_p0 = scmp.eq.s32.totalorder %s26_s17, 0  ;;  %p349_p1 = scmp.ne.s32.totalorder %s26_s17, 0 }
   0xc   : > { %p33_p2 = scmp.eq.s32.totalorder %s674_s15, 1  ;;  %p38_p3 = scmp.ne.s32.totalorder %s670_s14, %s666_s13 }
   0xd   : > { %s725_s19 = scalar_select %p27_p0, %s670_s14, %s29_s18  }
   0xe   : > { %p727_p4 = por %p349_p1, %p33_p2  ;;  %p39_p5 = scmp.eq.s32.totalorder %s348_s0, 1 }
   0xf   : > { %p350_p7 = scmp.ge.s32.totalorder %s674_s15, 2 }
  0x10   : > { %p731_p6 = por %p39_p5, %p38_p3  ;;  %s53_s22 = sand.u32 (!%p350_p7), 1, %s670_s14  }
  0x11   : > { %48 = sbr.rel (%p350_p7) target bundleno = 149 (0x95), region = 12  ;;  %s738_s23 = sshll.u32 (!%p350_p7), %s674_s15, 3 }
  0x12   : > { %s351_s24 = sshll.u32 (!%p350_p7), %s53_s22, 3  ;;  %s57_s25 = sld [smem:[#allocation4 + %s738_s23]] (!%p350_p7) }
  0x13   : > { %s72_s26 = sadd.s32 (!%p350_p7), 1, %s738_s23  ;;  %s744_s27 = scalar_lea.vmem (!%p350_p7), [#allocation5], %s351_s24 }
  0x14   : > { %s68_s28 = sshll.u32 (!%p350_p7), %s744_s27, 4  ;;  %s73_s29 = sld [smem:[#allocation4 + %s72_s26]] (!%p350_p7)  ;;  %s747_s28 = int_to_ptr.vmem [resolvable:$true] %s68_s28 }
  0x15   : > { %s75_s30 = scalar_lea.vmem (!%p350_p7), %s744_s27, 1 [#allocation5]  ;;  %s90_s4 = sadd.s32 (!%p350_p7), 2, %s738_s23 }
  0x16   : > { %s750_s3 = sshll.u32 %s75_s30, 4  ;;  %s754_s5 = sld [smem:[#allocation4 + %s90_s4]]  ;;  %s87_s3 = int_to_ptr.vmem [resolvable:$true] %s750_s3 }
  0x17   : > { %s93_s9 = scalar_lea.vmem %s744_s27, 2 [#allocation5]  ;;  %s768_s4 = scalar_lea.hbm %s881_s1, 32 }
  0x18   : > { %s58_s8 = scalar_lea.hbm %s881_s1, %s57_s25  ;;  %s760_s11 = sshll.u32 %s93_s9, 4  ;;  %s105_s11 = int_to_ptr.vmem [resolvable:$true] %s760_s11 }
  0x19   : > { %s66_s10 = sshll.u32 %s58_s8, 4  ;;  %s67_s10 = int_to_ptr.hbm [resolvable:$true] %s66_s10 }
  0x1a   : > { %s74_s17 = scalar_lea.hbm %s881_s1, %s73_s29  ;;  %s420_s18 = sshra.s32 %s67_s10, 4  ;;  %s421_s18 = int_to_ptr.hbm [resolvable:$true] %s420_s18 }
  0x1b   : > { %s422_s24 = scalar_lea.hbm %s421_s18, 1  ;;  %p425_p9 = scmp.lt.s32.totalorder %s421_s18, %s881_s1 }
  0x1c   : > { %p423_p8 = scmp.ne.s32.totalorder %s421_s18, %s422_s24  ;;  %p426_p10 = scmp.lt.s32.totalorder %s768_s4, %s422_s24 }
  0x1e   : > { %p427_p11 = por %p426_p10, %p425_p9 }
  0x20   : > { %p428_p12 = pnand %p427_p11, %p423_p8 }
  0x22   : > { %431 = shalt.err (!%p428_p12)  }
  0x23   : > { %71 = dma.hbm_to_vmem [thread:$0]  %s67_s10, 16, %s747_s28, [#allocation2] }
  0x24   : > { %s84_s29 = sshll.u32 %s74_s17, 4  ;;  %s92_s9 = scalar_lea.hbm %s881_s1, %s754_s5  ;;  %s85_s29 = int_to_ptr.hbm [resolvable:$true] %s84_s29 }
  0x25   : > { %s444_s12 = sshra.s32 %s85_s29, 4  ;;  %s445_s12 = int_to_ptr.hbm [resolvable:$true] %s444_s12 }
  0x26   : > { %s446_s0 = scalar_lea.hbm %s445_s12, 1  ;;  %p449_p0 = scmp.lt.s32.totalorder %s445_s12, %s881_s1 }
  0x27   : > { %p447_p13 = scmp.ne.s32.totalorder %s445_s12, %s446_s0  ;;  %p450_p1 = scmp.lt.s32.totalorder %s768_s4, %s446_s0 }
  0x29   : > { %p451_p2 = por %p450_p1, %p449_p0 }
  0x2b   : > { %p452_p3 = pnand %p451_p2, %p447_p13 }
  0x2d   : > { %455 = shalt.err (!%p452_p3)  }
  0x2e   : > { %89 = dma.hbm_to_vmem [thread:$0]  %s85_s29, 16, %s87_s3, [#allocation2 + $0x1] }
  0x2f   : > { %s102_s10 = sshll.u32 %s92_s9, 4  ;;  %s108_s17 = sadd.s32 3, %s738_s23  ;;  %s103_s10 = int_to_ptr.hbm [resolvable:$true] %s102_s10 }
  0x30   : > { %s109_s5 = sld [smem:[#allocation4 + %s108_s17]]  ;;  %s468_s26 = sshra.s32 %s103_s10, 4  ;;  %s469_s26 = int_to_ptr.hbm [resolvable:$true] %s468_s26 }
  0x31   : > { %s470_s30 = scalar_lea.hbm %s469_s26, 1  ;;  %p473_p7 = scmp.lt.s32.totalorder %s469_s26, %s881_s1 }
  0x32   : > { %p471_p5 = scmp.ne.s32.totalorder %s469_s26, %s470_s30  ;;  %p474_p8 = scmp.lt.s32.totalorder %s768_s4, %s470_s30 }
  0x34   : > { %p475_p9 = por %p474_p8, %p473_p7 }
  0x36   : > { %p476_p10 = pnand %p475_p9, %p471_p5 }
  0x38   : > { %479 = shalt.err (!%p476_p10)  }
  0x39   : > { %107 = dma.hbm_to_vmem [thread:$0]  %s103_s10, 16, %s105_s11, [#allocation2 + $0x2] }
  0x3a   : > { %s111_s3 = scalar_lea.vmem %s744_s27, 3 [#allocation5]  ;;  %s126_s29 = sadd.s32 4, %s738_s23 }
  0x3b   : > { %s122_s7 = sshll.u32 %s111_s3, 4  ;;  %s127_s8 = sld [smem:[#allocation4 + %s126_s29]]  ;;  %s123_s7 = int_to_ptr.vmem [resolvable:$true] %s122_s7 }
  0x3c   : > { %s129_s9 = scalar_lea.vmem %s744_s27, 4 [#allocation5]  ;;  %s144_s0 = sadd.s32 5, %s738_s23 }
  0x3d   : > { %s794_s12 = sshll.u32 %s129_s9, 4  ;;  %s110_s11 = scalar_lea.hbm %s881_s1, %s109_s5  ;;  %s141_s12 = int_to_ptr.vmem [resolvable:$true] %s794_s12 }
  0x3e   : > { %s120_s10 = sshll.u32 %s110_s11, 4  ;;  %s801_s17 = sld [smem:[#allocation4 + %s144_s0]]  ;;  %s121_s10 = int_to_ptr.hbm [resolvable:$true] %s120_s10 }
  0x3f   : > { %s147_s26 = scalar_lea.vmem %s744_s27, 5 [#allocation5]  ;;  %s492_s30 = sshra.s32 %s121_s10, 4  ;;  %s493_s30 = int_to_ptr.hbm [resolvable:$true] %s492_s30 }
  0x40   : > { %s494_s6 = scalar_lea.hbm %s493_s30, 1  ;;  %p497_p12 = scmp.lt.s32.totalorder %s493_s30, %s881_s1 }
  0x41   : > { %p495_p11 = scmp.ne.s32.totalorder %s493_s30, %s494_s6  ;;  %p498_p13 = scmp.lt.s32.totalorder %s768_s4, %s494_s6 }
  0x43   : > { %p499_p0 = por %p498_p13, %p497_p12 }
  0x45   : > { %p500_p1 = pnand %p499_p0, %p495_p11 }
  0x47   : > { %503 = shalt.err (!%p500_p1)  }
  0x48   : > { %125 = dma.hbm_to_vmem [thread:$0]  %s121_s10, 16, %s123_s7, [#allocation2 + $0x3] }
  0x49   : > { %s128_s9 = scalar_lea.hbm %s881_s1, %s127_s8  ;;  %s811_s0 = sshll.u32 %s147_s26, 4  ;;  %s159_s0 = int_to_ptr.vmem [resolvable:$true] %s811_s0 }
  0x4a   : > { %s138_s18 = sshll.u32 %s128_s9, 4  ;;  %s162_s24 = sadd.s32 6, %s738_s23  ;;  %s139_s18 = int_to_ptr.hbm [resolvable:$true] %s138_s18 }
  0x4b   : > { %s516_s11 = sshra.s32 %s139_s18, 4  ;;  %s517_s11 = int_to_ptr.hbm [resolvable:$true] %s516_s11 }
  0x4c   : > { %s518_s30 = scalar_lea.hbm %s517_s11, 1  ;;  %p521_p3 = scmp.lt.s32.totalorder %s517_s11, %s881_s1 }
  0x4d   : > { %p519_p2 = scmp.ne.s32.totalorder %s517_s11, %s518_s30  ;;  %p522_p5 = scmp.lt.s32.totalorder %s768_s4, %s518_s30 }
  0x4f   : > { %p523_p7 = por %p522_p5, %p521_p3 }
  0x51   : > { %p524_p8 = pnand %p523_p7, %p519_p2 }
  0x53   : > { %527 = shalt.err (!%p524_p8)  }
  0x54   : > { %143 = dma.hbm_to_vmem [thread:$0]  %s139_s18, 16, %s141_s12, [#allocation2 + $0x4] }
  0x55   : > { %s146_s10 = scalar_lea.hbm %s881_s1, %s801_s17  ;;  %s163_s26 = sld [smem:[#allocation4 + %s162_s24]] }
  0x56   : > { %s156_s3 = sshll.u32 %s146_s10, 4  ;;  %s165_s5 = scalar_lea.vmem %s744_s27, 6 [#allocation5]  ;;  %s157_s3 = int_to_ptr.hbm [resolvable:$true] %s156_s3 }
  0x57   : > { %s826_s29 = sshll.u32 %s165_s5, 4  ;;  %s540_s9 = sshra.s32 %s157_s3, 4  ;;  %s541_s9 = int_to_ptr.hbm [resolvable:$true] %s540_s9  ;;  %s177_s29 = int_to_ptr.vmem [resolvable:$true] %s826_s29 }
  0x58   : > { %s542_s11 = scalar_lea.hbm %s541_s9, 1  ;;  %p545_p10 = scmp.lt.s32.totalorder %s541_s9, %s881_s1 }
  0x59   : > { %p543_p9 = scmp.ne.s32.totalorder %s541_s9, %s542_s11  ;;  %p546_p11 = scmp.lt.s32.totalorder %s768_s4, %s542_s11 }
  0x5b   : > { %p547_p12 = por %p546_p11, %p545_p10 }
  0x5d   : > { %p548_p13 = pnand %p547_p12, %p543_p9 }
  0x5f   : > { %551 = shalt.err (!%p548_p13)  }
  0x60   : > { %161 = dma.hbm_to_vmem [thread:$0]  %s157_s3, 16, %s159_s0, [#allocation2 + $0x5] }
  0x61   : > { %s180_s12 = sadd.s32 7, %s738_s23  ;;  %s183_s18 = scalar_lea.vmem %s744_s27, 7 [#allocation5] }
  0x62   : > { %s181_s17 = sld [smem:[#allocation4 + %s180_s12]]  ;;  %s164_s7 = scalar_lea.hbm %s881_s1, %s163_s26 }
  0x63   : > { %s174_s8 = sshll.u32 %s164_s7, 4  ;;  %s194_s10 = sshll.u32 %s183_s18, 4  ;;  %s175_s8 = int_to_ptr.hbm [resolvable:$true] %s174_s8  ;;  %s195_s10 = int_to_ptr.vmem [resolvable:$true] %s194_s10 }
  0x64   : > { %s564_s5 = sshra.s32 %s175_s8, 4  ;;  %s565_s5 = int_to_ptr.hbm [resolvable:$true] %s564_s5 }
  0x65   : > { %s566_s9 = scalar_lea.hbm %s565_s5, 1  ;;  %p569_p1 = scmp.lt.s32.totalorder %s565_s5, %s881_s1 }
  0x66   : > { %p567_p0 = scmp.ne.s32.totalorder %s565_s5, %s566_s9  ;;  %p570_p2 = scmp.lt.s32.totalorder %s768_s4, %s566_s9 }
  0x68   : > { %p571_p3 = por %p570_p2, %p569_p1 }
  0x6a   : > { %p572_p5 = pnand %p571_p3, %p567_p0 }
  0x6c   : > { %575 = shalt.err (!%p572_p5)  }
  0x6d   : > { %179 = dma.hbm_to_vmem [thread:$0]  %s175_s8, 16, %s177_s29, [#allocation2 + $0x6] }
  0x6e   : > { %s182_s26 = scalar_lea.hbm %s881_s1, %s181_s17 }
  0x6f   : > { %s192_s30 = sshll.u32 %s182_s26, 4  ;;  %s193_s30 = int_to_ptr.hbm [resolvable:$true] %s192_s30 }
  0x70   : > { %s588_s6 = sshra.s32 %s193_s30, 4  ;;  %s589_s6 = int_to_ptr.hbm [resolvable:$true] %s588_s6 }
  0x71   : > { %s590_s12 = scalar_lea.hbm %s589_s6, 1  ;;  %p593_p8 = scmp.lt.s32.totalorder %s589_s6, %s881_s1 }
  0x72   : > { %p591_p7 = scmp.ne.s32.totalorder %s589_s6, %s590_s12  ;;  %p594_p9 = scmp.lt.s32.totalorder %s768_s4, %s590_s12 }
  0x74   : > { %p595_p10 = por %p594_p9, %p593_p8 }
  0x76   : > { %p596_p11 = pnand %p595_p10, %p591_p7 }
  0x78   : > { %599 = shalt.err (!%p596_p11)  }
  0x79   : > { %197 = dma.hbm_to_vmem [thread:$0]  %s193_s30, 16, %s195_s10, [#allocation2 + $0x7] }
  0x7a   : > { %s676_s29 = smov 0  }
  0x7b LB: >> { %p204_p12 = scmp.lt.s32.totalorder %s678_s29, 0  ;;  %s205_s17 = ssub.s32 0, %s678_s29  ;;  %s678_s29 = sphi %s676_s29, %s203_s29  }
  0x7c   : >> { %s353_s25 = smin.u32 %s678_s29, %s205_s17 }
  0x7d   : >> { %s207_s7 = sand.u32 7, %s353_s25  }
  0x7e   : >> { %s208_s8 = ssub.s32 0, %s207_s7 }
  0x7f   : >> { %s889_s8 = smov (!%p204_p12, %s208_s8), %s207_s7 }
  0x80   : >> { %p355_p13 = scmp.lt.s32.totalorder %s889_s8, 0  ;;  %s214_s5 = sadd.s32 8, %s889_s8 }
  0x82   : >> { %s891_s5 = smov (!%p355_p13, %s214_s5), %s889_s8 }
  0x83   : >> { %s216_s9 = scalar_lea.sflag [#allocation2], %s891_s5 }
  0x84   : >> { %658 = dma.done.wait %s216_s9, 16 }
  0x85   : >> { %659 = vsyncadd %s216_s9, 4294967280  ;;  %s203_s29 = sadd.s32 1, %s678_s29  }
  0x86   : >> { %p200_p0 = scmp.ge.s32.totalorder %s203_s29, 8  }
  0x87   : > { %s231_s0 = scalar_lea.hbm (%p200_p0), %s882_s2, %s738_s23  ;;  %s221_s27 = scalar_lea.sflag (%p200_p0), [#allocation6], %s53_s22 }
  0x88   : > { %202 = sbr.rel (!%p200_p0) target bundleno = 123 (0x7b), region = 113  ;;  %s235_s3 = sshll.u32 (%p200_p0), %s231_s0, 4  ;;  %s236_s3 = int_to_ptr.hbm [resolvable:$true] %s235_s3 }
  0x89   : > { %s626_s11 = sshra.s32 (%p200_p0), %s236_s3, 4  ;;  %s632_s12 = scalar_lea.hbm (%p200_p0), %s882_s2, 16  ;;  %s627_s11 = int_to_ptr.hbm [resolvable:$true] %s626_s11 }
  0x8a   : > { %s628_s26 = scalar_lea.hbm (%p200_p0), %s627_s11, 8  ;;  %p633_p5 = scmp.lt.s32.totalorder (%p200_p0), %s627_s11, %s882_s2 }
  0x8b   : > { %p629_p1 = scmp.ne.s32.totalorder (%p200_p0), %s627_s11, %s628_s26  ;;  %p634_p7 = scmp.lt.s32.totalorder (%p200_p0), %s632_s12, %s628_s26 }
  0x8d   : > { %p630_p2 = pnand %p629_p1, %p727_p4  ;;  %p635_p8 = por %p634_p7, %p633_p5 }
  0x8f   : > { %p631_p3 = pneg %p630_p2 }
  0x91   : > { %p636_p9 = pnand %p635_p8, %p631_p3 }
  0x93   : > { %639 = shalt.err (!%p636_p9)
}
  0x94   : > { %368 = dma.vmem_to_hbm [thread:$0]  (%p727_p4), %s747_s28, 128, %s236_s3, %s221_s27  }
  0x95 PF: > { %p374_p10 = scmp.ge.s32.totalorder %s674_s15, 1  ;;  %s247_s22 = sand.u32 1, %s666_s13  }
  0x96   : > { %s248_s23 = scalar_lea.sflag [#allocation6], %s247_s22 }
  0x97   : > { %p371_p11 = pnand %p374_p10, %p731_p6 }
  0x99   : > { %p372_p12 = pneg %p371_p11 }
  0x9b   : > { %661 = dma.done.wait (%p372_p12), %s248_s23, 128  }
  0x9c   : > { %663 = vsyncadd (%p372_p12), %s248_s23, 4294967168  ;;  %p20_p13 = scmp.ge.s32.totalorder %s716_s16, 3   ;;  %s885_s13 = smov %s670_s14 }
  0x9d   : > { %s886_s14 = smov %s725_s19  ;;  %s887_s15 = smov %s716_s16 }
  0x9e   :  { %22 = sbr.rel (!%p20_p13) target bundleno = 9 (0x9), region = 124 }
  0xa3   :  { %254 = vsyncpa [#allocation6], 1 }
  0xa4   :  { %256 = vsyncpa [#allocation6 + $0x1], 1 }
  0xa5   :  { %257 = vsyncmov [#allocation2] }
  0xa8   :  { %s258_s15 = vpop.sfrf %257 }
  0xa9   :  { %p360_p4 = scmp.ne.s32.totalorder %s258_s15, 0 }
  0xab   :  { %262 = shalt.err (%p360_p4)  }
  0xac   :  { %264 = vsyncmov [#allocation2 + $0x1] }
  0xaf   :  { %s265_s20 = vpop.sfrf %264 }
  0xb0   :  { %p361_p6 = scmp.ne.s32.totalorder %s265_s20, 0 }
  0xb2   :  { %269 = shalt.err (%p361_p6)  }
  0xb3   :  { %271 = vsyncmov [#allocation2 + $0x2] }
  0xb6   :  { %s272_s21 = vpop.sfrf %271 }
  0xb7   :  { %p362_p0 = scmp.ne.s32.totalorder %s272_s21, 0 }
  0xb9   :  { %276 = shalt.err (%p362_p0)  }
  0xba   :  { %278 = vsyncmov [#allocation2 + $0x3] }
  0xbd   :  { %s279_s28 = vpop.sfrf %278 }
  0xbe   :  { %p363_p1 = scmp.ne.s32.totalorder %s279_s28, 0 }
  0xc0   :  { %283 = shalt.err (%p363_p1)  }
  0xc1   :  { %285 = vsyncmov [#allocation2 + $0x4] }
  0xc4   :  { %s286_s16 = vpop.sfrf %285 }
  0xc5   :  { %p364_p2 = scmp.ne.s32.totalorder %s286_s16, 0 }
  0xc7   :  { %290 = shalt.err (%p364_p2)  }
  0xc8   :  { %292 = vsyncmov [#allocation2 + $0x5] }
  0xcb   :  { %s293_s1 = vpop.sfrf %292 }
  0xcc   :  { %p365_p3 = scmp.ne.s32.totalorder %s293_s1, 0 }
  0xce   :  { %297 = shalt.err (%p365_p3)  }
  0xcf   :  { %299 = vsyncmov [#allocation2 + $0x6] }
  0xd2   :  { %s300_s2 = vpop.sfrf %299 }
  0xd3   :  { %p366_p5 = scmp.ne.s32.totalorder %s300_s2, 0 }
  0xd5   :  { %304 = shalt.err (%p366_p5)  }
  0xd6   :  { %306 = vsyncmov [#allocation2 + $0x7] }
  0xd9   :  { %s307_s13 = vpop.sfrf %306 }
  0xda   :  { %p367_p7 = scmp.ne.s32.totalorder %s307_s13, 0 }
  0xdc   :  { %311 = shalt.err (%p367_p7)  }

</bundles_post_ra>
